<compile_context>
chip_gen: v5e
topology: v5e:2x2
jax: 0.10.0
libtpu: 0.0.40
codegen_flags: <defaults>
</compile_context>

<pallas_src>
import jax
import jax.numpy as jnp
from jax.experimental import pallas as pl
from jax.experimental.pallas import tpu as pltpu


def _round_up(x: int, m: int) -> int:
    return ((x + m - 1) // m) * m


def _device_defaults():
    """(default batch tile, #TensorCores to shard the grid over)."""
    try:
        kind = jax.devices()[0].device_kind.lower()
    except Exception:  # pragma: no cover - defensive; keep the kernel runnable
        kind = ""
    if "v7" in kind:
        return 8192, 2   # 2 TC/chip, 3.2 TB/s HBM, 64 MiB physical VMEM
    if "v6" in kind:
        return 4096, 1
    if "v5" in kind:
        return 4096, 1   # needs vmem_limit_bytes raised past the 16 MiB default
    return 4096, 1


def _fused_linear_kernel(x_ref, w_ref, b_ref, o_ref):
    # x_ref: [bB, Kp]   w_ref: [Kp, C]   b_ref: [1, C]   o_ref: [bB, C]
    # HIGHEST precision is free here (HBM-bound, MXU idle) and keeps f32 accuracy.
    o_ref[...] = (
        jnp.dot(
            x_ref[...],
            w_ref[...],
            preferred_element_type=jnp.float32,
            precision=jax.lax.Precision.HIGHEST,
        )
        + b_ref[...]
    ).astype(o_ref.dtype)


def linear_baseline_forward(
    x,
    w_time,
    b_time,
    w_space,
    b_space,
    *,
    block_b: int | None = None,
    use_pallas: bool | None = None,
    compute_dtype=jnp.float32,
):
    """Forward pass of LinearBaseline.

    x: [B, S, T]; w_time: [1, T]; b_time: [1]; w_space: [C, S]; b_space: [C].
    Returns: [B, C] float32.

    compute_dtype=jnp.bfloat16 halves the dominant x HBM traffic (~2x at large B)
    if the model's accuracy tolerance allows it; default is float32.
    """
    B, S, T = x.shape
    C = w_space.shape[0]
    K = S * T

    # --- wrapper-side algebraic weight fusion (f32) --------------------------
    w_space_t = jnp.transpose(w_space).astype(jnp.float32)            # [S, C]
    w_time_f = w_time.astype(jnp.float32)[0]                          # [T]
    # W_fused[s*T + t, c] = w_time[t] * w_space[c, s]   (matches x.reshape(B, S*T))
    w_fused = (w_space_t[:, None, :] * w_time_f[None, :, None]).reshape(K, C)
    # b_fused[c] = b_space[c] + b_time * sum_s w_space[c, s]
    b_fused = (
        b_space.astype(jnp.float32)
        + b_time.astype(jnp.float32)[0] * jnp.sum(w_space.astype(jnp.float32), axis=1)
    ).reshape(1, C)

    # Lane-dense flatten in the wrapper; pad K to a multiple of 128 so the hot
    # x stream keeps unmasked, lane-dense vector loads for any (S, T).
    x_flat = x.reshape(B, K)
    K_pad = _round_up(K, 128)
    if K_pad != K:
        x_flat = jnp.pad(x_flat, ((0, 0), (0, K_pad - K)))
        w_fused = jnp.pad(w_fused, ((0, K_pad - K), (0, 0)))

    x_flat = x_flat.astype(compute_dtype)
    w_fused = w_fused.astype(compute_dtype)

    # --- tiny-batch fast path (launch/pipeline overhead dominates) -----------
    if use_pallas is None:
        use_pallas = B >= 512
    if not use_pallas:
        return (
            x_flat.astype(jnp.float32) @ w_fused.astype(jnp.float32) + b_fused
        ).astype(jnp.float32)

    # --- batch tiling ---------------------------------------------------------
    default_block_b, tc_shards = _device_defaults()
    if block_b is None:
        block_b = default_block_b
        # Cap the tile so (a) tiny batches don't allocate huge buffers and
        # (b) on v7x the grid has >= 2 points to shard across both TensorCores.
        block_b = min(block_b, max(8, _round_up(pl.cdiv(B, tc_shards), 8)))
    block_b = max(8, _round_up(block_b, 8))
    grid = (pl.cdiv(B, block_b),)

    itemsize = jnp.dtype(compute_dtype).itemsize
    lane_c = max(C, 128)  # narrow C is lane-padded to 128 inside VMEM
    vmem_needed = (
        2 * block_b * K_pad * itemsize       # double-buffered x tiles
        + 2 * block_b * lane_c * 4           # double-buffered (lane-padded) out tiles
        + K_pad * lane_c * itemsize          # fused weight (single-buffered)
        + lane_c * 4                         # fused bias
        + (4 << 20)                          # headroom
    )
    # >= 32 MiB (v5e default scoped is only 16 MiB); <= 48 MiB (safe on v7x's 64 MiB).
    vmem_limit = int(min(max(vmem_needed, 32 << 20), 48 << 20))

    cost = pl.CostEstimate(
        flops=2 * B * K_pad * C,
        transcendentals=0,
        bytes_accessed=(
            B * K_pad * itemsize + K_pad * C * itemsize + C * 4 + B * C * 4
        ),
    )

    return pl.pallas_call(
        _fused_linear_kernel,
        out_shape=jax.ShapeDtypeStruct((B, C), jnp.float32),
        grid_spec=pltpu.PrefetchScalarGridSpec(
            num_scalar_prefetch=0,
            grid=grid,
            in_specs=[
                # Hot x tile: lane-dense K, batch-tiled over the grid.
                pl.BlockSpec((block_b, K_pad), lambda i: (i, 0)),
                # Grid-constant fused weight / bias: single-buffered residents.
                pl.BlockSpec((K_pad, C), lambda i: (0, 0),
                             pipeline_mode=pl.Buffered(1)),
                pl.BlockSpec((1, C), lambda i: (0, 0),
                             pipeline_mode=pl.Buffered(1)),
            ],
            # Output spans the full (narrow) C dim -> one contiguous DMA per tile;
            # deliberately not padded in HBM (would add writeback traffic).
            out_specs=pl.BlockSpec((block_b, C), lambda i: (i, 0)),
        ),
        compiler_params=pltpu.CompilerParams(
            dimension_semantics=("parallel",),
            vmem_limit_bytes=vmem_limit,
        ),
        cost_estimate=cost,
    )(x_flat, w_fused, b_fused)


def _reference(x, w_time, b_time, w_space, b_space):
    h = jnp.einsum("bst,t->bs", x, w_time[0]) + b_time[0]            # time_linear + squeeze
    return jnp.einsum("bs,cs->bc", h, w_space) + b_space[None, :]    # space_linear


if __name__ == "__main__":
    # Small shapes consistent with the module's forward.
    batch = 2
    space_dim = 32
    segment_duration = 8
    num_classes = 4

    key = jax.random.PRNGKey(0)
    k_x, k_wt, k_bt, k_ws, k_bs = jax.random.split(key, 5)

    x = jax.random.normal(k_x, (batch, space_dim, segment_duration), dtype=jnp.float32)

    # PyTorch-style Linear init: U(-1/sqrt(fan_in), 1/sqrt(fan_in)).
    bound_t = 1.0 / jnp.sqrt(jnp.float32(segment_duration))
    w_time = jax.random.uniform(k_wt, (1, segment_duration), jnp.float32, -bound_t, bound_t)
    b_time = jax.random.uniform(k_bt, (1,), jnp.float32, -bound_t, bound_t)

    bound_s = 1.0 / jnp.sqrt(jnp.float32(space_dim))
    w_space = jax.random.uniform(k_ws, (num_classes, space_dim), jnp.float32, -bound_s, bound_s)
    b_space = jax.random.uniform(k_bs, (num_classes,), jnp.float32, -bound_s, bound_s)

    # Force the Pallas path so the kernel itself is exercised at this tiny shape.
    out = linear_baseline_forward(x, w_time, b_time, w_space, b_space, use_pallas=True)
    out = jax.block_until_ready(out)

    ref = _reference(x, w_time, b_time, w_space, b_space)
    assert out.shape == (batch, num_classes)
    assert jnp.allclose(out, ref, atol=1e-4, rtol=1e-4), (out, ref)

    print("KERNEL_OK")
</pallas_src>

<mosaic_0001>
module attributes {stable_mosaic.version = 11 : i64} {
  func.func @_fused_linear_kernel(%arg0: i32, %arg1: memref<8x256xf32, #tpu.memory_space<vmem>>, %arg2: memref<256x4xf32, #tpu.memory_space<vmem>>, %arg3: memref<1x4xf32, #tpu.memory_space<vmem>>, %arg4: memref<8x4xf32, #tpu.memory_space<vmem>>) attributes {dimension_semantics = [#tpu.dimension_semantics<parallel>], iteration_bounds = array<i64: 1>, scalar_prefetch = 0 : i64, scratch_operands = 0 : i64, tpu.core_type = #tpu.core_type<tc>, window_params = [{transform_indices = @transform_0, window_bounds = array<i64: 8, 256>}, {pipeline_mode = #tpu.pipeline_mode<synchronous>, transform_indices = @transform_1, window_bounds = array<i64: 256, 4>}, {pipeline_mode = #tpu.pipeline_mode<synchronous>, transform_indices = @transform_2, window_bounds = array<i64: 1, 4>}, {transform_indices = @transform_3, window_bounds = array<i64: 8, 4>}]} {
    %c0 = arith.constant 0 : index
    %c0_0 = arith.constant 0 : index
    %0 = vector.load %arg1[%c0, %c0_0] : memref<8x256xf32, #tpu.memory_space<vmem>>, vector<8x256xf32>
    %c0_1 = arith.constant 0 : index
    %c0_2 = arith.constant 0 : index
    %1 = vector.load %arg2[%c0_1, %c0_2] : memref<256x4xf32, #tpu.memory_space<vmem>>, vector<256x4xf32>
    %cst = arith.constant dense<0.000000e+00> : vector<8x4xf32>
    %2 = tpu.matmul %0, %1, %cst {dimension_numbers = #tpu.dot_dimension_numbers<[1], [0], [0], [1], [0, 0, 1, 1], [], []>, precision = #tpu.contract_precision<fp32>} : vector<8x256xf32>, vector<256x4xf32>, vector<8x4xf32> -> vector<8x4xf32>
    %c0_3 = arith.constant 0 : index
    %c0_4 = arith.constant 0 : index
    %3 = vector.load %arg3[%c0_3, %c0_4] : memref<1x4xf32, #tpu.memory_space<vmem>>, vector<1x4xf32>
    %4 = vector.broadcast %3 : vector<1x4xf32> to vector<8x4xf32>
    %5 = arith.addf %2, %4 : vector<8x4xf32>
    %c0_5 = arith.constant 0 : index
    %c0_6 = arith.constant 0 : index
    %6 = vector.load %arg4[%c0_5, %c0_6] : memref<8x4xf32, #tpu.memory_space<vmem>>, vector<8x4xf32>
    tpu.vector_store %arg4[%c0_5, %c0_6], %5 {strides = array<i32>} : memref<8x4xf32, #tpu.memory_space<vmem>>, vector<8x4xf32>,
    return
  }
  func.func @transform_0(%arg0: i32) -> (i32, i32) {
    %c0_i32 = arith.constant 0 : i32
    %c0_i32_0 = arith.constant 0 : i32
    return %arg0, %c0_i32 : i32, i32
  }
  func.func @transform_1(%arg0: i32) -> (i32, i32) {
    %c0_i32 = arith.constant 0 : i32
    %c0_i32_0 = arith.constant 0 : i32
    %c0_i32_1 = arith.constant 0 : i32
    return %c0_i32, %c0_i32_0 : i32, i32
  }
  func.func @transform_2(%arg0: i32) -> (i32, i32) {
    %c0_i32 = arith.constant 0 : i32
    %c0_i32_0 = arith.constant 0 : i32
    %c0_i32_1 = arith.constant 0 : i32
    return %c0_i32, %c0_i32_0 : i32, i32
  }
  func.func @transform_3(%arg0: i32) -> (i32, i32) {
    %c0_i32 = arith.constant 0 : i32
    %c0_i32_0 = arith.constant 0 : i32
    return %arg0, %c0_i32 : i32, i32
  }
}

</mosaic_0001>

<bundles_post_ra>
// kernel: tpu_custom_call.1
= control target key start
LH: loop header
LB: loop body
LE: loop exit
PB: predicated region body
PF: predicated region fallthrough
CT: control target
= control target key end

     0   :  { %8 = vsyncpa [#allocation3], 0  ;;  %vm752_vm0 = vcmask 31744   ;;  %s1445_s0 = inlined_call_operand.vmem [shape: f32[2,256], index: 0, kind: input, shape index: {}]   ;;  %s1446_s1 = inlined_call_operand.vmem [shape: f32[256,4], index: 1, kind: input, shape index: {}]   ;;  %s1447_s2 = inlined_call_operand.vmem [shape: f32[1,4], index: 2, kind: input, shape index: {}]   ;;  %s1448_s3 = inlined_call_operand.hbm [shape: f32[2,4], index: 3, kind: output, shape index: {}]  }
   0x1   :  { %v34_v0 = vld [vmem:[%s1446_s1 + $0x78] sm:$0xff]  ;;  %v33_v1 = vld [vmem:[%s1446_s1 + $0x70] sm:$0xff]  ;;  %v32_v4 = vld [vmem:[%s1446_s1 + $0x68] sm:$0xff] }
   0x2   :  { %v831_v2 = vand.u32 4294901760, %v34_v0  ;;  %v833_v3 = vand.u32 4294901760, %v33_v1  ;;  %v31_v5 = vld [vmem:[%s1446_s1 + $0x60] sm:$0xff]  ;;  %v30_v6 = vld [vmem:[%s1446_s1 + $0x58] sm:$0xff]  ;;  %v844_v7 = vand.u32 4294901760, %v32_v4  ;;  %v29_v10 = vld [vmem:[%s1446_s1 + $0x50] sm:$0xff] }
   0x3   :  { %v846_v8 = vand.u32 4294901760, %v31_v5  ;;  %v848_v9 = vand.u32 4294901760, %v30_v6  ;;  %v28_v11 = vld [vmem:[%s1446_s1 + $0x48] sm:$0xff]  ;;  %v27_v12 = vld [vmem:[%s1446_s1 + $0x40] sm:$0xff]  ;;  %v867_v15 = vand.u32 4294901760, %v29_v10  ;;  %v26_v20 = vld [vmem:[%s1446_s1 + $0x38] sm:$0xff] }
   0x4   :  { %71 = vmatpush.msra.mxu0 %v831_v2  ;;  %v861_v13 = vsub.f32 %v34_v0, %v831_v2  ;;  %v864_v14 = vsub.f32 %v33_v1, %v833_v3  ;;  %267 = vmatpush.msra.mxu3 %v831_v2  ;;  %v869_v16 = vand.u32 4294901760, %v28_v11  ;;  %v872_v17 = vsub.f32 %v32_v4, %v844_v7  ;;  %v25_v25 = vld [vmem:[%s1446_s1 + $0x30] sm:$0xff]  ;;  %v24_v36 = vld [vmem:[%s1446_s1 + $0x28] sm:$0xff]  ;;  %v23_v41 = vld [vmem:[%s1446_s1 + $0x20] sm:$0xff] }
   0x5   :  { %v875_v18 = vsub.f32 %v31_v5, %v846_v8  ;;  %v878_v19 = vsub.f32 %v30_v6, %v848_v9  ;;  %v887_v23 = vand.u32 4294901760, %v27_v12  ;;  %v890_v24 = vsub.f32 %v29_v10, %v867_v15  ;;  %v22_v47 = vld [vmem:[%s1446_s1 + $0x18] sm:$0xff]  ;;  %v21_v55 = vld [vmem:[%s1446_s1 + $0x10] sm:$0xff]  ;;  %v15_v56 = vld [vmem:[%s1445_s0] sm:$0xf] }
   0x6   :  { %73 = vmatpush.msra.mxu0 %v833_v3  ;;  %214 = vmatpush.msra.mxu2 %v861_v13  ;;  %v113_v21 = vand.u32 4294901760, %v861_v13  ;;  %v1464_v22 = vand.u32 4294901760, %v864_v14  ;;  %v1462_v26 = vand.u32 4294901760, %v872_v17  ;;  %v899_v28 = vsub.f32 %v28_v11, %v869_v16  ;;  %v20_v60 = vld [vmem:[%s1446_s1 + $0x8] sm:$0xff]  ;;  %v16_v61 = vld [vmem:[%s1445_s0 + $0x4] sm:$0xf] }
   0x7   :  { %269 = vmatpush.msra.mxu3 %v833_v3  ;;  %v1461_v27 = vand.u32 4294901760, %v875_v18  ;;  %v909_v31 = vand.u32 4294901760, %v26_v20  ;;  %v1458_v32 = vand.u32 4294901760, %v878_v19  ;;  %v916_v34 = vand.u32 4294901760, %v25_v25  ;;  %v50_v0 = vld [vmem:[%s1446_s1 + $0xf8] sm:$0xff]  ;;  %v49_v1 = vld [vmem:[%s1446_s1 + $0xf0] sm:$0xff] }
   0x8   :  { %75 = vmatpush.msra.mxu0 %v844_v7  ;;  %217 = vmatpush.msra.mxu2 %v864_v14  ;;  %v114_v29 = vsub.f32 %v861_v13, %v113_v21  ;;  %v120_v30 = vsub.f32 %v864_v14, %v1464_v22  ;;  %v126_v33 = vsub.f32 %v872_v17, %v1462_v26  ;;  %v1457_v35 = vand.u32 4294901760, %v890_v24  ;;  %v17_v4 = vld [vmem:[%s1445_s0 + $0x8] sm:$0xf]  ;;  %v18_v11 = vld [vmem:[%s1445_s0 + $0xc] sm:$0xf] }
   0x9   :  { %271 = vmatpush.msra.mxu3 %v844_v7  ;;  %v132_v39 = vsub.f32 %v875_v18, %v1461_v27  ;;  %v928_v40 = vsub.f32 %v27_v12, %v887_v23  ;;  %v1455_v42 = vand.u32 4294901760, %v899_v28  ;;  %v138_v44 = vsub.f32 %v878_v19, %v1458_v32  ;;  %59 = vst [vmem:[#allocation1] ss:$4 sm:$0xff] %v15_v56 }
   0xa   :  { %77 = vmatpush.msra.mxu0 %v846_v8  ;;  %v115_v37 = vand.u32 4294901760, %v114_v29  ;;  %220 = vmatpush.msra.mxu2 %v872_v17  ;;  %v121_v38 = vand.u32 4294901760, %v120_v30  ;;  %v127_v43 = vand.u32 4294901760, %v126_v33  ;;  %v939_v45 = vand.u32 4294901760, %v24_v36  ;;  %61 = vst [vmem:[#allocation1 + $0x1] ss:$4 sm:$0xff] %v16_v61 }
   0xb   :  { %273 = vmatpush.msra.mxu3 %v846_v8  ;;  %v942_v46 = vsub.f32 %v26_v20, %v909_v31  ;;  %v144_v48 = vsub.f32 %v890_v24, %v1457_v35  ;;  %v952_v49 = vand.u32 4294901760, %v23_v41  ;;  %v133_v50 = vand.u32 4294901760, %v132_v39  ;;  %63 = vst [vmem:[#allocation1 + $0x2] ss:$4 sm:$0xff] %v17_v4  ;;  %v48_v39 = vld [vmem:[%s1446_s1 + $0xe8] sm:$0xff]  ;;  %v46_v4 = vld [vmem:[%s1446_s1 + $0xd8] sm:$0xff] }
   0xc   :  { %79 = vmatpush.msra.mxu0 %v848_v9  ;;  %116 = vmatpush.msra.mxu1 %v115_v37  ;;  %v1454_v51 = vand.u32 4294901760, %v928_v40  ;;  %v957_v52 = vsub.f32 %v25_v25, %v916_v34  ;;  %v150_v53 = vsub.f32 %v899_v28, %v1455_v42  ;;  %v964_v54 = vand.u32 4294901760, %v22_v47  ;;  %v19_v25 = vld [vmem:[%s1446_s1] sm:$0xff]  ;;  %65 = vst [vmem:[#allocation1 + $0x3] ss:$4 sm:$0xff] %v18_v11 }
   0xd   :  { %223 = vmatpush.msra.mxu2 %v875_v18  ;;  %275 = vmatpush.msra.mxu3 %v848_v9  ;;  %v139_v57 = vand.u32 4294901760, %v138_v44  ;;  %v1453_v58 = vand.u32 4294901760, %v942_v46  ;;  %v975_v59 = vsub.f32 %v24_v36, %v939_v45  ;;  %v145_v62 = vand.u32 4294901760, %v144_v48 }
   0xe   :  { %81 = vmatpush.msra.mxu0 %v867_v15  ;;  %122 = vmatpush.msra.mxu1 %v121_v38  ;;  %v986_v63 = vsub.f32 %v23_v41, %v952_v49  ;;  %v156_v5 = vsub.f32 %v928_v40, %v1454_v51  ;;  %v1001_v6 = vand.u32 4294901760, %v21_v55  ;;  %v1452_v10 = vand.u32 4294901760, %v957_v52  ;;  %v43_v51 = vld [vmem:[%s1446_s1 + $0xc0] sm:$0xff] }
   0xf   :  { %226 = vmatpush.msra.mxu2 %v878_v19  ;;  %277 = vmatpush.msra.mxu3 %v867_v15  ;;  %v151_v12 = vand.u32 4294901760, %v150_v53  ;;  %v1010_v20 = vsub.f32 %v22_v47, %v964_v54  ;;  %v162_v29 = vsub.f32 %v942_v46, %v1453_v58  ;;  %v1019_v30 = vand.u32 4294901760, %v20_v60  ;;  %v47_v53 = vld [vmem:[%s1446_s1 + $0xe0] sm:$0xff]  ;;  %v44_v58 = vld [vmem:[%s1446_s1 + $0xc8] sm:$0xff] }
  0x10   :  { %83 = vmatpush.msra.mxu0 %v869_v16  ;;  %128 = vmatpush.msra.mxu1 %v127_v43  ;;  %v1450_v33 = vand.u32 4294901760, %v975_v59  ;;  %v1022_v36 = vand.u32 4294901760, %v50_v0  ;;  %v1449_v37 = vand.u32 4294901760, %v986_v63  ;;  %v1027_v38 = vand.u32 4294901760, %v49_v1 }
  0x11   :  { %229 = vmatpush.msra.mxu2 %v890_v24  ;;  %279 = vmatpush.msra.mxu3 %v869_v16  ;;  %v157_v41 = vand.u32 4294901760, %v156_v5  ;;  %v168_v43 = vsub.f32 %v957_v52, %v1452_v10  ;;  %v1036_v44 = vand.u32 4294901760, %v19_v25  ;;  %v1039_v47 = vsub.f32 %v21_v55, %v1001_v6 }
  0x12   :  { %85 = vmatpush.msra.mxu0 %v887_v23  ;;  %134 = vmatpush.msra.mxu1 %v133_v50  ;;  %v1451_v48 = vand.u32 4294901760, %v1010_v20  ;;  %v1045_v50 = vsub.f32 %v50_v0, %v1022_v36  ;;  %v163_v56 = vand.u32 4294901760, %v162_v29  ;;  %v174_v55 = vsub.f32 %v975_v59, %v1450_v33 }
  0x13   :  { %232 = vmatpush.msra.mxu2 %v899_v28  ;;  %281 = vmatpush.msra.mxu3 %v887_v23  ;;  %v1057_v61 = vand.u32 4294901760, %v48_v39  ;;  %v1065_v0 = vsub.f32 %v49_v1, %v1027_v38  ;;  %v1456_v5 = vand.u32 4294901760, %v1039_v47  ;;  %v1073_v11 = vsub.f32 %v19_v25, %v1036_v44 }
  0x14   :  { %87 = vmatpush.msra.mxu0 %v909_v31  ;;  %140 = vmatpush.msra.mxu1 %v139_v57  ;;  %v1055_v57 = vsub.f32 %v20_v60, %v1019_v30  ;;  %v169_v60 = vand.u32 4294901760, %v168_v43  ;;  %v186_v1 = vsub.f32 %v1010_v20, %v1451_v48  ;;  %v1459_v29 = vand.u32 4294901760, %v1045_v50 }
  0x15   :  { %235 = vmatpush.msra.mxu2 %v928_v40  ;;  %283 = vmatpush.msra.mxu3 %v909_v31  ;;  %1473 = vst [vmem:[#allocation5_spill] sm:$0xff] %v1057_v61  ;;  %v175_v25 = vand.u32 4294901760, %v174_v55  ;;  %v1091_v33 = vand.u32 4294901760, %v46_v4  ;;  %v1463_v10 = vand.u32 4294901760, %v1065_v0  ;;  %v1125_v32 = vand.u32 4294901760, %v44_v58 }
  0x16   :  { %89 = vmatpush.msra.mxu0 %v916_v34  ;;  %146 = vmatpush.msra.mxu1 %v145_v62  ;;  %v180_v62 = vsub.f32 %v986_v63, %v1449_v37  ;;  %v1460_v43 = vand.u32 4294901760, %v1055_v57  ;;  %v1089_v37 = vsub.f32 %v48_v39, %v1057_v61  ;;  %v192_v39 = vsub.f32 %v1039_v47, %v1456_v5 }
  0x17   :  { %238 = vmatpush.msra.mxu2 %v942_v46  ;;  %285 = vmatpush.msra.mxu3 %v916_v34  ;;  %v187_v42 = vand.u32 4294901760, %v186_v1  ;;  %v1123_v35 = vsub.f32 %v46_v4, %v1091_v33  ;;  %v42_v1 = vld [vmem:[%s1446_s1 + $0xb8] sm:$0xff] }
  0x18   :  { %91 = vmatpush.msra.mxu0 %v939_v45  ;;  %152 = vmatpush.msra.mxu1 %v151_v12  ;;  %v1075_v12 = vand.u32 4294901760, %v47_v53  ;;  %v181_v48 = vand.u32 4294901760, %v180_v62  ;;  %v1466_v5 = vand.u32 4294901760, %v1089_v37  ;;  %v193_v4 = vand.u32 4294901760, %v192_v39 }
  0x19   :  { %241 = vmatpush.msra.mxu2 %v957_v52  ;;  %287 = vmatpush.msra.mxu3 %v939_v45  ;;  %v1148_v22 = vand.u32 4294901760, %v42_v1  ;;  %v1468_v13 = vand.u32 4294901760, %v1123_v35 }
  0x1a   :  { %93 = vmatpush.msra.mxu0 %v952_v49  ;;  %158 = vmatpush.msra.mxu1 %v157_v41  ;;  %v45_v41 = vld [vmem:[%s1446_s1 + $0xd0] sm:$0xff]  ;;  %v1105_v55 = vsub.f32 %v47_v53, %v1075_v12  ;;  %v198_v53 = vsub.f32 %v1055_v57, %v1460_v43 }
  0x1b   :  { %244 = vmatpush.msra.mxu2 %v975_v59  ;;  %289 = vmatpush.msra.mxu3 %v952_v49  ;;  %v1107_v62 = vand.u32 4294901760, %v45_v41 }
  0x1c   :  { %95 = vmatpush.msra.mxu0 %v964_v54  ;;  %164 = vmatpush.msra.mxu1 %v163_v56  ;;  %v1465_v56 = vand.u32 4294901760, %v1073_v11  ;;  %v1467_v27 = vand.u32 4294901760, %v1105_v55  ;;  %v199_v39 = vand.u32 4294901760, %v198_v53  ;;  %v40_v53 = vld [vmem:[%s1446_s1 + $0xa8] sm:$0xff] }
  0x1d   :  { %247 = vmatpush.msra.mxu2 %v986_v63  ;;  %291 = vmatpush.msra.mxu3 %v964_v54  ;;  %v1143_v26 = vsub.f32 %v45_v41, %v1107_v62  ;;  %v467_v41 = vsub.f32 %v1089_v37, %v1466_v5 }
  0x1e   :  { %97 = vmatpush.msra.mxu0 %v1001_v6  ;;  %170 = vmatpush.msra.mxu1 %v169_v60  ;;  %v455_v60 = vsub.f32 %v1045_v50, %v1459_v29  ;;  %v1135_v29 = vand.u32 4294901760, %v43_v51  ;;  %v204_v43 = vsub.f32 %v1073_v11, %v1465_v56 }
  0x1f   :  { %250 = vmatpush.msra.mxu2 %v1010_v20  ;;  %293 = vmatpush.msra.mxu3 %v1001_v6 }
  0x20   :  { %99 = vmatpush.msra.mxu0 %v1019_v30  ;;  %176 = vmatpush.msra.mxu1 %v175_v25  ;;  %v461_v25 = vsub.f32 %v1065_v0, %v1463_v10  ;;  %v456_v10 = vand.u32 4294901760, %v455_v60  ;;  %v1474_v60 = vand.u32 4294901760, %v864_v14  ;;  %v205_v5 = vand.u32 4294901760, %v204_v43 }
  0x21   :  { %253 = vmatpush.msra.mxu2 %v1039_v47  ;;  %295 = vmatpush.msra.mxu3 %v1019_v30  ;;  %v468_v43 = vand.u32 4294901760, %v467_v41 }
  0x22   :  { %101 = vmatpush.msra.mxu0 %v1036_v44  ;;  %182 = vmatpush.msra.mxu1 %v181_v48  ;;  %v41_v48 = vld [vmem:[%s1446_s1 + $0xb0] sm:$0xff]  ;;  %v462_v56 = vand.u32 4294901760, %v461_v25  ;;  %v1475_v25 = vand.u32 4294901760, %v872_v17  ;;  %v1190_v17 = vand.u32 4294901760, %v40_v53 }
  0x23   :  { %256 = vmatpush.msra.mxu2 %v1055_v57  ;;  %297 = vmatpush.msra.mxu3 %v1036_v44 }
  0x24   :  { %308 = vmatpush.msrb.mxu0 %v113_v21  ;;  %188 = vmatpush.msra.mxu1 %v187_v42  ;;  %v1159_v21 = vsub.f32 %v44_v58, %v1125_v32  ;;  %v1165_v42 = vsub.f32 %v43_v51, %v1135_v29  ;;  %v473_v58 = vsub.f32 %v1105_v55, %v1467_v27 }
  0x25   :  { %259 = vmatpush.msra.mxu2 %v1073_v11  ;;  %457 = vmatpush.msrb.mxu3 %v456_v10  ;;  %v1180_v51 = vsub.f32 %v42_v1, %v1148_v22  ;;  %v479_v27 = vsub.f32 %v1123_v35, %v1468_v13  ;;  %v1476_v10 = vand.u32 4294901760, %v875_v18 }
  0x26   :  { %312 = vmatpush.msrb.mxu0 %v1474_v60  ;;  %194 = vmatpush.msra.mxu1 %v193_v4  ;;  %v1175_v60 = vand.u32 4294901760, %v41_v48  ;;  %v39_v4 = vld [vmem:[%s1446_s1 + $0xa0] sm:$0xff]  ;;  %v474_v41 = vand.u32 4294901760, %v473_v58  ;;  %v1479_v1 = vand.u32 4294901760, %v1159_v21 }
  0x27   :  { %412 = vmatpush.msrb.mxu2 %v1022_v36  ;;  %463 = vmatpush.msrb.mxu3 %v462_v56  ;;  %v1205_v18 = vand.u32 4294901760, %v39_v4  ;;  %v1478_v56 = vand.u32 4294901760, %v878_v19  ;;  %v480_v58 = vand.u32 4294901760, %v479_v27  ;;  %v1480_v19 = vand.u32 4294901760, %v890_v24  ;;  %v37_v27 = vld [vmem:[%s1446_s1 + $0x90] sm:$0xff] }
  0x28   :  { %316 = vmatpush.msrb.mxu0 %v1475_v25  ;;  %200 = vmatpush.msra.mxu1 %v199_v39  ;;  %v38_v39 = vld [vmem:[%s1446_s1 + $0x98] sm:$0xff]  ;;  %v1477_v25 = vand.u32 4294901760, %v1143_v26  ;;  %v1203_v14 = vsub.f32 %v41_v48, %v1175_v60  ;;  %v1216_v48 = vsub.f32 %v40_v53, %v1190_v17 }
  0x29   :  { %414 = vmatpush.msrb.mxu2 %v1027_v38  ;;  %469 = vmatpush.msrb.mxu3 %v468_v43 }
  0x2a   :  { %320 = vmatpush.msrb.mxu0 %v1476_v10  ;;  %206 = vmatpush.msra.mxu1 %v205_v5  ;;  %v485_v13 = vsub.f32 %v1143_v26, %v1477_v25  ;;  %v1471_v10 = vand.u32 4294901760, %v1180_v51  ;;  %v66_v5 = vld.sshfl [vmem:[#allocation1] sm:$0xff pattern:$0x73625140]  ;;  %v491_v25 = vsub.f32 %v1159_v21, %v1479_v1  ;;  %v1472_v43 = vand.u32 4294901760, %v1203_v14 }
  0x2b   :  { %416 = vmatpush.msrb.mxu2 %v1057_v61  ;;  %v1218_v61 = vand.u32 4294901760, %v38_v39  ;;  %475 = vmatpush.msrb.mxu3 %v474_v41  ;;  %v1232_v1 = vsub.f32 %v39_v4, %v1205_v18  ;;  %v1234_v24 = vand.u32 4294901760, %v66_v5  ;;  %v514_v41 = vand.u32 4294901760, %v1216_v48 }
  0x2c   :  { %324 = vmatpush.msrb.mxu0 %v1478_v56  ;;  %375 = vmatpush.msrb.mxu1 %v831_v2  ;;  %v1481_v2 = vand.u32 4294901760, %v1165_v42  ;;  %v486_v53 = vand.u32 4294901760, %v485_v13  ;;  %v36_v13 = vld [vmem:[%s1446_s1 + $0x88] sm:$0xff]  ;;  %v492_v4 = vand.u32 4294901760, %v491_v25 }
  0x2d   :  { %418 = vmatpush.msrb.mxu2 %v1075_v12  ;;  %481 = vmatpush.msrb.mxu3 %v480_v58  ;;  %v509_v58 = vsub.f32 %v1203_v14, %v1472_v43  ;;  %v1264_v25 = vsub.f32 %v66_v5, %v1234_v24 }
  0x2e   :  { %328 = vmatpush.msrb.mxu0 %v1480_v19  ;;  %377 = vmatpush.msrb.mxu1 %v833_v3  ;;  %v497_v56 = vsub.f32 %v1165_v42, %v1481_v2  ;;  %v1482_v3 = vand.u32 4294901760, %v899_v28  ;;  %v503_v19 = vsub.f32 %v1180_v51, %v1471_v10  ;;  %v1247_v2 = vand.u32 4294901760, %v37_v27  ;;  %v35_v10 = vld [vmem:[%s1446_s1 + $0x80] sm:$0xff] }
  0x2f   :  { %420 = vmatpush.msrb.mxu2 %v1091_v33  ;;  %v1250_v28 = vsub.f32 %v38_v39, %v1218_v61  ;;  %487 = vmatpush.msrb.mxu3 %v486_v53  ;;  %v520_v39 = vand.u32 4294901760, %v1232_v1  ;;  %v515_v53 = vsub.f32 %v1216_v48, %v514_v41  ;;  %v1279_v43 = vand.u32 4294901760, %v35_v10 }
  0x30   :  { %332 = vmatpush.msrb.mxu0 %v1482_v3  ;;  %379 = vmatpush.msrb.mxu1 %v844_v7  ;;  %v1483_v7 = vand.u32 4294901760, %v928_v40  ;;  %v498_v3 = vand.u32 4294901760, %v497_v56  ;;  %v1266_v40 = vand.u32 4294901760, %v36_v13  ;;  %v504_v56 = vand.u32 4294901760, %v503_v19 }
  0x31   :  { %422 = vmatpush.msrb.mxu2 %v1107_v62  ;;  %493 = vmatpush.msrb.mxu3 %v492_v4  ;;  %v1277_v5 = vsub.f32 %v37_v27, %v1247_v2  ;;  %v521_v19 = vsub.f32 %v1232_v1, %v520_v39  ;;  %v104_v4 = vand.u32 4294901760, %v1264_v25 }
  0x32   :  { %336 = vmatpush.msrb.mxu0 %v1483_v7  ;;  %381 = vmatpush.msrb.mxu1 %v846_v8  ;;  %v1484_v8 = vand.u32 4294901760, %v942_v46  ;;  %v526_v7 = vand.u32 4294901760, %v1250_v28  ;;  %v1485_v46 = vand.u32 4294901760, %v957_v52  ;;  %v1290_v27 = vsub.f32 %v36_v13, %v1266_v40 }
  0x33   :  { %424 = vmatpush.msrb.mxu2 %v1125_v32  ;;  %499 = vmatpush.msrb.mxu3 %v498_v3  ;;  %v532_v3 = vand.u32 4294901760, %v1277_v5  ;;  %v1487_v13 = vand.u32 4294901760, %v986_v63 }
  0x34   :  { %340 = vmatpush.msrb.mxu0 %v1484_v8  ;;  %383 = vmatpush.msrb.mxu1 %v848_v9  ;;  %v510_v9 = vand.u32 4294901760, %v509_v58  ;;  %v1486_v8 = vand.u32 4294901760, %v975_v59  ;;  %v527_v52 = vsub.f32 %v1250_v28, %v526_v7  ;;  %v1301_v58 = vsub.f32 %v35_v10, %v1279_v43  ;;  %v67_v59 = vld.sshfl [vmem:[#allocation1 + $0x8] sm:$0xff pattern:$0x73625140] }
  0x35   :  { %426 = vmatpush.msrb.mxu2 %v1135_v29  ;;  %505 = vmatpush.msrb.mxu3 %v504_v56  ;;  %v105_v56 = vsub.f32 %v1264_v25, %v104_v4 }
  0x36   :  { %344 = vmatpush.msrb.mxu0 %v1485_v46  ;;  %385 = vmatpush.msrb.mxu1 %v867_v15  ;;  %v516_v15 = vand.u32 4294901760, %v515_v53  ;;  %v538_v53 = vand.u32 4294901760, %v1290_v27  ;;  %v1488_v46 = vand.u32 4294901760, %v1010_v20  ;;  %v528_v63 = vand.u32 4294901760, %v527_v52 }
  0x37   :  { %428 = vmatpush.msrb.mxu2 %v1148_v22  ;;  %511 = vmatpush.msrb.mxu3 %v510_v9  ;;  %v544_v10 = vand.u32 4294901760, %v1301_v58  ;;  %v1317_v9 = vand.u32 4294901760, %v67_v59  ;;  %v1491_v52 = vand.u32 4294901760, %v1073_v11 }
  0x38   :  { %348 = vmatpush.msrb.mxu0 %v1486_v8  ;;  %387 = vmatpush.msrb.mxu1 %v869_v16  ;;  %v522_v16 = vand.u32 4294901760, %v521_v19  ;;  %v1489_v19 = vand.u32 4294901760, %v1039_v47  ;;  %v539_v20 = vsub.f32 %v1290_v27, %v538_v53  ;;  %v1490_v8 = vand.u32 4294901760, %v1055_v57 }
  0x39   :  { %430 = vmatpush.msrb.mxu2 %v1175_v60  ;;  %517 = vmatpush.msrb.mxu3 %v516_v15  ;;  %v1334_v15 = vsub.f32 %v67_v59, %v1317_v9 }
  0x3a   :  { %352 = vmatpush.msrb.mxu0 %v1487_v13  ;;  %389 = vmatpush.msrb.mxu1 %v887_v23  ;;  %v533_v23 = vsub.f32 %v1277_v5, %v532_v3 }
  0x3b   :  { %432 = vmatpush.msrb.mxu2 %v1190_v17  ;;  %523 = vmatpush.msrb.mxu3 %v522_v16  ;;  %v445_v13 = vand.u32 4294901760, %v1334_v15 }
  0x3c   :  { %356 = vmatpush.msrb.mxu0 %v1488_v46  ;;  %391 = vmatpush.msrb.mxu1 %v909_v31  ;;  %v106_v31 = vand.u32 4294901760, %v105_v56  ;;  %v534_v47 = vand.u32 4294901760, %v533_v23 }
  0x3d   :  { %434 = vmatpush.msrb.mxu2 %v1205_v18  ;;  %529 = vmatpush.msrb.mxu3 %v528_v63 }
  0x3e   :  { %360 = vmatpush.msrb.mxu0 %v1489_v19  ;;  %393 = vmatpush.msrb.mxu1 %v916_v34  ;;  %v545_v34 = vsub.f32 %v1301_v58, %v544_v10 }
  0x3f   :  { %436 = vmatpush.msrb.mxu2 %v1218_v61  ;;  %107 = vmatmul.f32.vlgmr.msra.gmra.mxu0 %v106_v31 }
  0x40   :  { %364 = vmatpush.msrb.mxu0 %v1490_v8  ;;  %395 = vmatpush.msrb.mxu1 %v939_v45  ;;  %v540_v45 = vand.u32 4294901760, %v539_v20  ;;  %v546_v57 = vand.u32 4294901760, %v545_v34 }
  0x41   :  { %438 = vmatpush.msrb.mxu2 %v1247_v2  ;;  %535 = vmatpush.msrb.mxu3 %v534_v47 }
  0x42   :  { %368 = vmatpush.msrb.mxu0 %v1491_v52  ;;  %397 = vmatpush.msrb.mxu1 %v952_v49  ;;  %v1492_v49 = vand.u32 4294901760, %v1045_v50 }
  0x43   :  { %440 = vmatpush.msrb.mxu2 %v1266_v40  ;;  %541 = vmatpush.msrb.mxu3 %v540_v45 }
  0x44   :  { %555 = vmatpush.msra.mxu0 %v1045_v50  ;;  %399 = vmatpush.msrb.mxu1 %v964_v54  ;;  %v446_v54 = vsub.f32 %v1334_v15, %v445_v13 }
  0x45   :  { %442 = vmatpush.msrb.mxu2 %v1279_v43  ;;  %547 = vmatpush.msrb.mxu3 %v546_v57 }
  0x46   :  { %558 = vmatpush.msra.mxu0 %v1065_v0  ;;  %401 = vmatpush.msrb.mxu1 %v1001_v6  ;;  %v1493_v6 = vand.u32 4294901760, %v1065_v0  ;;  %v447_v50 = vand.u32 4294901760, %v446_v54  ;;  %v1495_v0 = vand.u32 4294901760, %v1105_v55 }
  0x47   :  { %262 = vmatmul.f32.vlgmr.msra.gmra.mxu2 %v1264_v25  ;;  %301 = vmatmul.f32.vlgmr.msra.gmra.mxu3 %v104_v4 }
  0x48   :  { %561 = vmatpush.msra.mxu0 %v1089_v37  ;;  %649 = vmatpush.msra.mxu2 %v1492_v49 }
  0x49   :  { %403 = vmatpush.msrb.mxu1 %v1019_v30  ;;  %716 = vmatpush.msra.mxu3 %v1022_v36  ;;  %v1494_v30 = vand.u32 4294901760, %v1089_v37  ;;  %v1497_v37 = vand.u32 4294901760, %v1123_v35 }
  0x4a   :  { %564 = vmatpush.msra.mxu0 %v1105_v55  ;;  %653 = vmatpush.msra.mxu2 %v1493_v6 }
  0x4b   :  { %405 = vmatpush.msrb.mxu1 %v1036_v44  ;;  %718 = vmatpush.msra.mxu3 %v1027_v38  ;;  %v1496_v44 = vld [vmem:[#allocation5_spill] sm:$0xff] }
  0x4c   :  { %567 = vmatpush.msra.mxu0 %v1123_v35  ;;  %208 = vmatmul.f32.vlgmr.msra.gmra.mxu1 %v1234_v24  ;;  %v1499_v35 = vand.u32 4294901760, %v1159_v21 }
  0x4d   :  { %657 = vmatpush.msra.mxu2 %v1494_v30  ;;  %608 = vmatpush.msra.mxu1 %v1022_v36  ;;  %v1498_v36 = vand.u32 4294901760, %v1143_v26 }
  0x4e   :  { %570 = vmatpush.msra.mxu0 %v1143_v26  ;;  %720 = vmatpush.msra.mxu3 %v1496_v44  ;;  %v1500_v26 = vand.u32 4294901760, %v1165_v42 }
  0x4f   :  { %661 = vmatpush.msra.mxu2 %v1495_v0  ;;  %610 = vmatpush.msra.mxu1 %v1027_v38  ;;  %v1502_v38 = vand.u32 4294901760, %v1203_v14 }
  0x50   :  { %448 = vmatmul.f32.vlgmr.msrb.gmra.mxu2 %v447_v50  ;;  %573 = vmatpush.msra.mxu0 %v1159_v21 }
  0x51   :  { %612 = vmatpush.msra.mxu1 %v1496_v44  ;;  %665 = vmatpush.msra.mxu2 %v1497_v37 }
  0x52   :  { %722 = vmatpush.msra.mxu3 %v1075_v12  ;;  %370 = vmatmul.f32.vlgmr.msrb.gmra.mxu0 %v1234_v24 }
  0x53   :  { %549 = vmatmul.f32.vlgmr.msrb.gmra.mxu3 %v1317_v9  ;;  %576 = vmatpush.msra.mxu0 %v1165_v42 }
  0x54   :  { %614 = vmatpush.msra.mxu1 %v1075_v12  ;;  %669 = vmatpush.msra.mxu2 %v1498_v36 }
  0x55   :  { %724 = vmatpush.msra.mxu3 %v1091_v33  ;;  %407 = vmatmul.f32.vlgmr.msrb.gmra.mxu1 %v1234_v24 }
  0x56   :  { %579 = vmatpush.msra.mxu0 %v1180_v51  ;;  %616 = vmatpush.msra.mxu1 %v1091_v33  ;;  %v1501_v33 = vand.u32 4294901760, %v1180_v51 }
  0x57   :  { %673 = vmatpush.msra.mxu2 %v1499_v35  ;;  %726 = vmatpush.msra.mxu3 %v1107_v62 }
  0x58   :  { %582 = vmatpush.msra.mxu0 %v1203_v14  ;;  %618 = vmatpush.msra.mxu1 %v1107_v62 }
  0x59   :  { %677 = vmatpush.msra.mxu2 %v1500_v26  ;;  %728 = vmatpush.msra.mxu3 %v1125_v32 }
  0x5a   :  { %585 = vmatpush.msra.mxu0 %v1216_v48  ;;  %620 = vmatpush.msra.mxu1 %v1125_v32 }
  0x5b   :  { %681 = vmatpush.msra.mxu2 %v1501_v33  ;;  %730 = vmatpush.msra.mxu3 %v1135_v29 }
  0x5c   :  { %588 = vmatpush.msra.mxu0 %v1232_v1  ;;  %622 = vmatpush.msra.mxu1 %v1135_v29 }
  0x5d   :  { %685 = vmatpush.msra.mxu2 %v1502_v38  ;;  %732 = vmatpush.msra.mxu3 %v1148_v22 }
  0x5e   :  { %591 = vmatpush.msra.mxu0 %v1250_v28  ;;  %624 = vmatpush.msra.mxu1 %v1148_v22  ;;  %v775_v22 = vld [vmem:[%s1447_s2] ss:$0 sm:$0xff] }
  0x5f   :  { %689 = vmatpush.msra.mxu2 %v514_v41  ;;  %734 = vmatpush.msra.mxu3 %v1175_v60 }
  0x60   :  { %594 = vmatpush.msra.mxu0 %v1277_v5  ;;  %626 = vmatpush.msra.mxu1 %v1175_v60 }
  0x61   :  { %693 = vmatpush.msra.mxu2 %v520_v39  ;;  %736 = vmatpush.msra.mxu3 %v1190_v17 }
  0x62   :  { %597 = vmatpush.msra.mxu0 %v1290_v27  ;;  %628 = vmatpush.msra.mxu1 %v1190_v17 }
  0x63   :  { %697 = vmatpush.msra.mxu2 %v526_v7  ;;  %738 = vmatpush.msra.mxu3 %v1205_v18 }
  0x64   :  { %600 = vmatpush.msra.mxu0 %v1301_v58  ;;  %630 = vmatpush.msra.mxu1 %v1205_v18 }
  0x65   :  { %701 = vmatpush.msra.mxu2 %v532_v3  ;;  %740 = vmatpush.msra.mxu3 %v1218_v61 }
  0x66   :  { %603 = vmatmul.f32.vlgmr.msra.gmra.mxu0 %v1334_v15  ;;  %632 = vmatpush.msra.mxu1 %v1218_v61 }
  0x67   :  { %705 = vmatpush.msra.mxu2 %v538_v53  ;;  %742 = vmatpush.msra.mxu3 %v1247_v2 }
  0x68   :  { %634 = vmatpush.msra.mxu1 %v1247_v2 }
  0x69   :  { %709 = vmatpush.msra.mxu2 %v544_v10  ;;  %744 = vmatpush.msra.mxu3 %v1266_v40 }
  0x6a   :  { %711 = vmatmul.f32.vlgmr.msra.gmra.mxu2 %v1317_v9  ;;  %636 = vmatpush.msra.mxu1 %v1266_v40 }
  0x6b   :  { %746 = vmatpush.msra.mxu3 %v1279_v43 }
  0x6c   :  { %748 = vmatmul.f32.vlgmr.msra.gmra.mxu3 %v1317_v9  ;;  %638 = vmatpush.msra.mxu1 %v1279_v43 }
  0x6d   :  { %642 = vmatmul.f32.vlgmr.msra.gmra.mxu1 %v445_v13 }
  0xbc   :  { %v108_v32 = vpop.f32.mrf.mxu0 }
  0xbd   :  { %v109_v61 = vadd.f32 %v775_v22, %v108_v32 }
  0xc9   :  { %v209_v11 = vpop.f32.mrf.mxu1 }
  0xca   :  { %v210_v12 = vadd.f32 %v209_v11, %v109_v61  ;;  %v263_v29 = vpop.f32.mrf.mxu2  ;;  %v302_v62 = vpop.f32.mrf.mxu3 }
  0xcc   :  { %v264_v55 = vadd.f32 %v263_v29, %v210_v12 }
  0xce   :  { %v303_v21 = vadd.f32 %v302_v62, %v264_v55 }
  0xcf   :  { %v371_v42 = vpop.f32.mrf.mxu0 }
  0xd0   :  { %v372_v14 = vadd.f32 %v371_v42, %v303_v21 }
  0xd2   :  { %v408_v60 = vpop.f32.mrf.mxu1 }
  0xd3   :  { %v409_v51 = vadd.f32 %v408_v60, %v372_v14  ;;  %v449_v17 = vpop.f32.mrf.mxu2 }
  0xd5   :  { %v450_v18 = vadd.f32 %v449_v17, %v409_v51 }
  0xd6   :  { %v550_v48 = vpop.f32.mrf.mxu3 }
  0xd7   :  { %v551_v1 = vadd.f32 %v550_v48, %v450_v18 }
  0xe3   :  { %v604_v43 = vpop.f32.mrf.mxu0 }
  0xe4   :  { %v605_v24 = vadd.f32 %v604_v43, %v551_v1 }
  0xea   :  { %v643_v41 = vpop.f32.mrf.mxu1 }
  0xeb   :  { %v644_v2 = vadd.f32 %v643_v41, %v605_v24 }
  0xed   :  { %v712_v28 = vpop.f32.mrf.mxu2 }
  0xee   :  { %v713_v39 = vadd.f32 %v712_v28, %v644_v2 }
  0xef   :  { %v749_v25 = vpop.f32.mrf.mxu3 }
  0xf0   :  { %v750_v40 = vadd.f32 %v749_v25, %v713_v39 }
  0xf2   :  { %753 = vst.msk [vmem:[#allocation2] sm:$0xff] %vm752_vm0, %v750_v40 }
  0xf3   :  { %757 = vsyncadd [#allocation3], 96  ;;  %s760_s30 = sshll.u32 %s1448_s3, 4  ;;  %s802_s4 = smov [#allocation2]   ;;  %s761_s30 = int_to_ptr.hbm [resolvable:$true] %s760_s30 }
  0xf4   :  { %s758_s5 = sshll.u32 %s802_s4, 4  ;;  %s803_s6 = smov 32   ;;  %s759_s5 = int_to_ptr.vmem [resolvable:$true] %s758_s5 }
  0xf5   :  { %s804_s7 = smov 2  }
  0xf6   :  { %766 = dma.vmem_to_hbm [thread:$0]  %s759_s5, 32, %s761_s30, [#allocation3], %s803_s6, %s803_s6, %s804_s7  }
  0xf7   :  { %800 = dma.done.wait [#allocation3], 128  }
  0xf8   :  { %801 = vsyncadd [#allocation3], 4294967168 }
  0xf9   :  { %771 = vsyncpa [#allocation3], 1 }

</bundles_post_ra>
